<compile_context>
chip_gen: v7x
topology: tpu7x:2x2x1
jax: 0.10.0
libtpu: 0.0.40
codegen_flags: <defaults>
</compile_context>

<pallas_src>
import numpy as np

import jax
import jax.numpy as jnp
from jax.experimental import pallas as pl
from jax.experimental.pallas import tpu as pltpu


# --------------------------- zero-copy primary path ---------------------------

def _noop_alias_kernel(x_ref, o_ref):
    # Both refs live in ANY (HBM) space and are aliased to the same buffer:
    # nothing to move.  touch() pins a read+write ordering dependency so the
    # aliased output counts as produced by this kernel.
    del x_ref
    pltpu.touch(o_ref)


def _view_zero_copy(x2d):
    n, flat = x2d.shape
    return pl.pallas_call(
        _noop_alias_kernel,
        out_shape=jax.ShapeDtypeStruct((n, flat), x2d.dtype),
        in_specs=[pl.BlockSpec(memory_space=pl.ANY)],
        out_specs=pl.BlockSpec(memory_space=pl.ANY),
        input_output_aliases={0: 0},
        compiler_params=pltpu.CompilerParams(has_side_effects=True),
        cost_estimate=pl.CostEstimate(flops=0, transcendentals=0, bytes_accessed=0),
    )(x2d)


# ------------------------- streaming-copy fallback path -----------------------

_VMEM_BUDGET_BYTES = 12 * 1024 * 1024  # 4 pipeline buffers (double-buffered in+out)


def _sublane_multiple(dtype):
    itemsize = jnp.dtype(dtype).itemsize
    if itemsize >= 4:
        return 8
    if itemsize == 2:
        return 16
    return 32


def _pick_tiles(n, flat, dtype):
    """Pick (tile_n, tile_flat) so that 4 * tile_n * tile_flat * itemsize fits
    the conservative VMEM budget on v5e / v6e / v7x defaults."""
    item = jnp.dtype(dtype).itemsize
    sub = _sublane_multiple(dtype)

    # Rows that fit with the full (lane-dense) flat axis per block.
    max_rows = _VMEM_BUDGET_BYTES // (4 * flat * item)

    if max_rows >= min(n, sub):
        if n <= sub:
            tile_n = n  # full-extent row block is always legal
        else:
            tile_n = (min(max_rows, n) // sub) * sub
            if tile_n >= n:
                # Whole batch fits one block: split into >=2 row blocks so
                # both v7x TensorCores get work (costs ~0.35us elsewhere).
                tile_n = pl.cdiv(pl.cdiv(n, 2), sub) * sub
        return tile_n, flat

    # Very large flat (big GAN feature maps): tile the flat axis too, in
    # multiples of 128 lanes, instead of blowing the VMEM budget.
    tile_n = min(n, sub)
    max_flat = _VMEM_BUDGET_BYTES // (4 * tile_n * item)
    tile_flat = max(128, (max_flat // 128) * 128)
    tile_flat = min(tile_flat, flat)
    return tile_n, tile_flat


def _copy_kernel(x_ref, o_ref):
    o_ref[...] = x_ref[...]


def _view_streaming_copy(x2d):
    n, flat = x2d.shape
    tile_n, tile_flat = _pick_tiles(n, flat, x2d.dtype)
    grid = (pl.cdiv(n, tile_n), pl.cdiv(flat, tile_flat))
    item = jnp.dtype(x2d.dtype).itemsize
    return pl.pallas_call(
        _copy_kernel,
        out_shape=jax.ShapeDtypeStruct((n, flat), x2d.dtype),
        grid=grid,
        in_specs=[pl.BlockSpec((tile_n, tile_flat), lambda i, j: (i, j))],
        out_specs=pl.BlockSpec((tile_n, tile_flat), lambda i, j: (i, j)),
        compiler_params=pltpu.CompilerParams(
            dimension_semantics=("parallel", "parallel"),
        ),
        # Honest roofline: the copy reads + writes the full array.
        cost_estimate=pl.CostEstimate(
            flops=0, transcendentals=0, bytes_accessed=2 * n * flat * item),
    )(x2d)


# ----------------------------------- wrapper ----------------------------------

def view_layer(x, channels, height, width):
    """Pallas implementation of ViewLayer.forward: x -> (N, C, H, W).

    NOTE: the zero-copy path aliases/donates x's device buffer into the
    output; keep a separate copy if you need `x` afterwards.
    """
    n = x.shape[0]
    flat = channels * height * width
    x2d = x.reshape(n, flat)  # free metadata reshape in the wrapper

    try:
        out2d = _view_zero_copy(x2d)
        out2d = jax.block_until_ready(out2d)  # surface any lowering issue here
    except Exception:
        # Fallback: explicit streaming copy (read+write of the full array).
        out2d = _view_streaming_copy(x2d)

    # The 4-D NCHW view is a zero-cost metadata reshape in the wrapper.
    return out2d.reshape(n, channels, height, width)


if __name__ == "__main__":
    # Small shapes consistent with the module: batch=2, C=4, H=16, W=16.
    N, C, H, W = 2, 4, 16, 16
    key = jax.random.PRNGKey(0)
    k0, k1 = jax.random.split(key)
    x = jax.random.normal(k0, (N, C * H * W), dtype=jnp.float32)

    # Snapshot the reference on host BEFORE the call: the zero-copy path
    # aliases/donates x's device buffer into the kernel output.
    ref = np.asarray(x).reshape(N, C, H, W)

    out = view_layer(x, C, H, W)
    out = jax.block_until_ready(out)

    assert out.shape == (N, C, H, W), out.shape
    assert out.dtype == jnp.float32
    assert np.array_equal(np.asarray(out), ref), "mismatch vs reference reshape"

    # Also exercise the streaming-copy fallback path explicitly (it is the
    # safety net if the ANY+alias lowering were ever rejected).
    N2, C2, H2, W2 = 16, 3, 8, 8
    x2 = jax.random.normal(k1, (N2, C2 * H2 * W2), dtype=jnp.float32)
    ref2 = np.asarray(x2).reshape(N2, C2, H2, W2)
    out2 = jax.block_until_ready(_view_streaming_copy(x2))
    assert np.array_equal(np.asarray(out2).reshape(N2, C2, H2, W2), ref2)

    print("KERNEL_OK")
</pallas_src>

<mosaic_0001>
module attributes {stable_mosaic.version = 11 : i64} {
  func.func @_noop_alias_kernel(%arg0: memref<2x1024xf32, #tpu.memory_space<any>>, %arg1: memref<2x1024xf32, #tpu.memory_space<any>>) attributes {dimension_semantics = [], scalar_prefetch = 0 : i64, scratch_operands = 0 : i64, tpu.core_type = #tpu.core_type<tc>} {
    return
  }
}

module attributes {stable_mosaic.version = 11 : i64} {
  func.func @_copy_kernel(%arg0: i32, %arg1: i32, %arg2: memref<2x1024xf32, #tpu.memory_space<vmem>>, %arg3: memref<2x1024xf32, #tpu.memory_space<vmem>>) attributes {dimension_semantics = [#tpu.dimension_semantics<parallel>, #tpu.dimension_semantics<parallel>], iteration_bounds = array<i64: 1, 1>, scalar_prefetch = 0 : i64, scratch_operands = 0 : i64, tpu.core_type = #tpu.core_type<tc>, window_params = [{transform_indices = @transform_0, window_bounds = array<i64: 2, 1024>}, {transform_indices = @transform_1, window_bounds = array<i64: 2, 1024>}]} {
    %c0 = arith.constant 0 : index
    %c0_0 = arith.constant 0 : index
    %0 = vector.load %arg2[%c0, %c0_0] : memref<2x1024xf32, #tpu.memory_space<vmem>>, vector<2x1024xf32>
    %c0_1 = arith.constant 0 : index
    %c0_2 = arith.constant 0 : index
    %1 = vector.load %arg3[%c0_1, %c0_2] : memref<2x1024xf32, #tpu.memory_space<vmem>>, vector<2x1024xf32>
    tpu.vector_store %arg3[%c0_1, %c0_2], %0 {strides = array<i32>} : memref<2x1024xf32, #tpu.memory_space<vmem>>, vector<2x1024xf32>,
    return
  }
  func.func @transform_0(%arg0: i32, %arg1: i32) -> (i32, i32) {
    %c0_i32 = arith.constant 0 : i32
    return %arg0, %arg1 : i32, i32
  }
  func.func @transform_1(%arg0: i32, %arg1: i32) -> (i32, i32) {
    %c0_i32 = arith.constant 0 : i32
    return %arg0, %arg1 : i32, i32
  }
}

</mosaic_0001>

<bundles_post_ra>
// kernel: tpu_custom_call.1
= control target key start
LH: loop header
LB: loop body
LE: loop exit
PB: predicated region body
PF: predicated region fallthrough
CT: control target
= control target key end

     0   :  { %s16_s0 = inlined_call_operand.hbm [shape: f32[2,1024], index: 0, kind: input, shape index: {}, may-alias: {0,1}]   ;;  %s17_s1 = inlined_call_operand.hbm [shape: f32[2,1024], index: 1, kind: output, shape index: {}, may-alias: {0,1}]  }

// kernel: tpu_custom_call.1
= control target key start
LH: loop header
LB: loop body
LE: loop exit
PB: predicated region body
PF: predicated region fallthrough
CT: control target
= control target key end

     0   :  { %6 = vsyncpa [#allocation3], 0  ;;  %s126_s0 = inlined_call_operand.hbm [shape: f32[2,1024], index: 0, kind: input, shape index: {}]   ;;  %s127_s1 = inlined_call_operand.hbm [shape: f32[2,1024], index: 1, kind: output, shape index: {}]  }
   0x1   :  { %7 = vsyncpa [#allocation4], 0  ;;  %s90_s6 = smov [#allocation2]   ;;  %s42_s10 = scalar_lea.hbm %s126_s0, 256 }
   0x2   :  { %s14_s7 = sshll.u32 %s90_s6, 4  ;;  %p43_p0 = scmp.ne.s32.totalorder %s126_s0, %s42_s10  ;;  %s15_s7 = int_to_ptr.vmem [resolvable:$true] %s14_s7 }
   0x3   :  { %p46_p1 = scmp.lt.u32.totalorder %s42_s10, %s126_s0 }
   0x5   :  { %p48_p2 = pnand %p46_p1, %p43_p0 }
   0x7   :  { %51 = shalt.err (!%p48_p2)
}
   0x8   :  { %s52_s15 = scalar_lea.vmem %s15_s7, 256  ;;  %p57_p4 = scmp.lt.s32.totalorder %s15_s7, %s15_s7 }
   0x9   :  { %p53_p3 = scmp.ne.s32.totalorder %s15_s7, %s52_s15  ;;  %p58_p5 = scmp.lt.s32.totalorder %s52_s15, %s52_s15 }
   0xb   :  { %p59_p6 = por %p58_p5, %p57_p4 }
   0xd   :  { %p60_p7 = pnand %p59_p6, %p53_p3 }
   0xf   :  { %63 = shalt.err (!%p60_p7)
}
  0x10   :  { %17 = dma.hbm_to_vmem [thread:$0]  %s126_s0, 256, %s15_s7, [#allocation3]  }
  0x11   :  { %86 = dma.done.wait [#allocation3], 256  }
  0x12   :  { %87 = vsyncadd [#allocation3], 4294967040  ;;  %s91_s18 = smov [#allocation5]   ;;  %v21_v0 = vld [vmem:[#allocation2] sm:$0xff]  ;;  %v22_v1 = vld [vmem:[#allocation2 + $0x8] sm:$0xff] }
  0x13   :  { %s31_s19 = sshll.u32 %s91_s18, 4  ;;  %23 = vst [vmem:[#allocation5] sm:$0xff] %v21_v0  ;;  %24 = vst [vmem:[#allocation5 + $0x8] sm:$0xff] %v22_v1  ;;  %s32_s19 = int_to_ptr.vmem [resolvable:$true] %s31_s19 }
  0x14   :  { %s64_s20 = scalar_lea.vmem %s32_s19, 256  ;;  %p69_p9 = scmp.lt.s32.totalorder %s32_s19, %s32_s19 }
  0x15   :  { %p65_p8 = scmp.ne.s32.totalorder %s32_s19, %s64_s20  ;;  %p70_p10 = scmp.lt.s32.totalorder %s64_s20, %s64_s20 }
  0x17   :  { %p71_p11 = por %p70_p10, %p69_p9 }
  0x19   :  { %p72_p12 = pnand %p71_p11, %p65_p8 }
  0x1b   :  { %75 = shalt.err (!%p72_p12)
}
  0x1c   :  { %s76_s0 = scalar_lea.hbm %s127_s1, 256 }
  0x1d   :  { %p77_p13 = scmp.ne.s32.totalorder %s127_s1, %s76_s0  ;;  %p80_p0 = scmp.lt.u32.totalorder %s76_s0, %s127_s1 }
  0x1f   :  { %p82_p1 = pnand %p80_p0, %p77_p13 }
  0x21   :  { %85 = shalt.err (!%p82_p1)
}
  0x22   :  { %34 = dma.vmem_to_hbm [thread:$0]  %s32_s19, 256, %s127_s1, [#allocation4]  }
  0x23   :  { %88 = dma.done.wait [#allocation4], 256  }
  0x24   :  { %89 = vsyncadd [#allocation4], 4294967040 }
  0x25   :  { %38 = vsyncpa [#allocation3], 1 }
  0x26   :  { %39 = vsyncpa [#allocation4], 1 }

</bundles_post_ra>
